<compile_context>
chip_gen: v7x
topology: tpu7x:2x2x1
jax: 0.10.0
libtpu: 0.0.40
codegen_flags: <defaults>
</compile_context>

<pallas_src>
import functools

import jax
import jax.numpy as jnp
from jax import lax
from jax.experimental import pallas as pl
from jax.experimental.pallas import tpu as pltpu


def _round_up(x, m):
    return ((x + m - 1) // m) * m


# ---------------------------------------------------------------------------
# Pallas kernel: accumulate per-lane partial sums of |x - p| and (x - p)^2.
# ---------------------------------------------------------------------------
def _identical_loss_kernel(x_ref, p_ref, l1_ref, l2_ref, *, steps, rows_total,
                           masked):
    # Grid = (cores, steps). Trailing ("arbitrary") axis is the reduction;
    # each core keeps its own resident (8, lane) output accumulators.
    s = pl.program_id(1)

    @pl.when(s == 0)
    def _():
        l1_ref[...] = jnp.zeros_like(l1_ref)
        l2_ref[...] = jnp.zeros_like(l2_ref)

    rt, lane = x_ref.shape
    diff = x_ref[...].astype(jnp.float32) - p_ref[...].astype(jnp.float32)

    if masked:
        # Ragged tail / duplicated (clamped) block: zero out rows that lie
        # beyond the logical row range of this grid step.
        c = pl.program_id(0)
        base = (c * steps + s) * rt
        limit = rows_total - base
        row_ids = lax.broadcasted_iota(jnp.int32, (rt, lane), 0)
        diff = jnp.where(row_ids < limit, diff, 0.0)

    # Fold the (row_tile, lane) block onto the (8, lane) accumulator with pure
    # elementwise (VPU) adds; the cross-lane reduce is deferred to the wrapper.
    absd = jnp.abs(diff).reshape(rt // 8, 8, lane)
    sqd = (diff * diff).reshape(rt // 8, 8, lane)
    l1_ref[...] += jnp.sum(absd, axis=0)
    l2_ref[...] += jnp.sum(sqd, axis=0)


def _pallas_l1_l2_sums(x, pred):
    """Returns (sum|x-pred|, sum (x-pred)^2) as f32 scalars via Pallas."""
    cdt = jnp.result_type(x.dtype, pred.dtype)
    xf = x.reshape(-1).astype(cdt)
    pf = pred.reshape(-1).astype(cdt)
    n_elems = xf.size

    itemsize = jnp.dtype(cdt).itemsize
    # Sublane packing: min second-to-last tile dim is 8 for f32, 16 for bf16.
    sub = max(8, 8 * (4 // max(1, itemsize)))

    # Pick a lane width that divides the element count when possible so the
    # reshape below is a free (metadata-only) view; fall back to padding.
    lane = None
    for cand in (512, 256, 128):
        if n_elems % cand == 0:
            lane = cand
            break
    if lane is None:
        lane = 512

    n_rows = pl.cdiv(n_elems, lane)
    rows_total = max(n_rows, sub)          # at least one full sublane tile
    padded_elems = rows_total * lane

    pad = padded_elems - n_elems
    if pad:
        # Both operands padded identically with zeros -> padded diff is 0,
        # so the accumulated sums stay exact.
        xf = jnp.pad(xf, (0, pad))
        pf = jnp.pad(pf, (0, pad))
    x2d = xf.reshape(rows_total, lane)
    p2d = pf.reshape(rows_total, lane)

    # ~2 MiB input blocks; multiple of the sublane packing.
    max_rows = max(sub, ((2 << 20) // (lane * itemsize)) // sub * sub)
    row_tile = min(max_rows, (rows_total // sub) * sub)

    num_blocks = pl.cdiv(rows_total, row_tile)
    num_cores = 2 if num_blocks >= 2 else 1
    steps = pl.cdiv(num_blocks, num_cores)

    # Static decision: is the grid ragged (partial last block and/or a
    # duplicated clamped block on the second core)?
    needs_mask = (num_blocks * row_tile != rows_total) or \
                 (num_cores * steps != num_blocks)

    if needs_mask:
        def in_map(c, s):
            # Clamp so we never index a block past the array; the kernel's
            # row mask zeroes the duplicated / out-of-range contribution.
            return (jnp.minimum(c * steps + s, num_blocks - 1), 0)
    else:
        def in_map(c, s):
            return (c * steps + s, 0)

    def out_map(c, s):
        return (c, 0)

    kernel = functools.partial(
        _identical_loss_kernel,
        steps=steps,
        rows_total=rows_total,
        masked=needs_mask,
    )

    # VMEM budget: 2 inputs x 2 buffers x block + tiny output accs + headroom.
    block_bytes = row_tile * lane * itemsize
    vmem_limit = int(min(32 * 1024 * 1024,
                         max(16 * 1024 * 1024, 4 * block_bytes + (6 << 20))))

    cost = pl.CostEstimate(
        flops=5 * int(n_elems),
        transcendentals=0,
        bytes_accessed=2 * int(padded_elems) * itemsize
        + 2 * num_cores * 8 * lane * 4,
    )

    l1_part, l2_part = pl.pallas_call(
        kernel,
        out_shape=(
            jax.ShapeDtypeStruct((num_cores * 8, lane), jnp.float32),
            jax.ShapeDtypeStruct((num_cores * 8, lane), jnp.float32),
        ),
        grid_spec=pltpu.PrefetchScalarGridSpec(
            num_scalar_prefetch=0,
            grid=(num_cores, steps),
            in_specs=[
                pl.BlockSpec((row_tile, lane), in_map),
                pl.BlockSpec((row_tile, lane), in_map),
            ],
            out_specs=[
                pl.BlockSpec((8, lane), out_map),
                pl.BlockSpec((8, lane), out_map),
            ],
        ),
        compiler_params=pltpu.CompilerParams(
            dimension_semantics=("parallel", "arbitrary"),
            vmem_limit_bytes=vmem_limit,
        ),
        cost_estimate=cost,
    )(x2d, p2d)

    # Tiny final reduce ((num_cores*8) x lane f32 each) done in plain JAX.
    return jnp.sum(l1_part), jnp.sum(l2_part)


# ---------------------------------------------------------------------------
# IdenticalLoss forward (JAX wrapper around the Pallas reduction kernel).
# ---------------------------------------------------------------------------
def identical_loss_forward(model_s2v, model_v2s, x, *, lambda_id1s, lambda_id2s):
    # Glue: apply the two external models (same as the PyTorch forward).
    mid = model_s2v(x)
    pred = model_v2s(mid)

    l1_sum, l2_sum = _pallas_l1_l2_sums(x, pred)

    n_elems = jnp.float32(x.size)
    loss_id1s = l1_sum / n_elems   # nn.L1Loss  (mean reduction)
    loss_id2s = l2_sum / n_elems   # nn.MSELoss (mean reduction)
    loss = loss_id1s * lambda_id1s + loss_id2s * lambda_id2s
    return loss, {"loss_id1s": loss_id1s, "loss_id2s": loss_id2s}


# ---------------------------------------------------------------------------
# Example / smoke test.
# ---------------------------------------------------------------------------
if __name__ == "__main__":
    key = jax.random.PRNGKey(0)
    B, T, D, D_MID = 2, 8, 32, 32   # batch, seq, hidden, mid-hidden

    k_x, k_w1, k_w2 = jax.random.split(key, 3)
    x = jax.random.normal(k_x, (B, T, D), dtype=jnp.float32)

    # Deterministic synthetic "models" (s2v / v2s) as linear maps.
    w_s2v = 0.05 * jax.random.normal(k_w1, (D, D_MID), dtype=jnp.float32)
    w_v2s = 0.05 * jax.random.normal(k_w2, (D_MID, D), dtype=jnp.float32)

    model_s2v = lambda z: jnp.einsum("btd,de->bte", z, w_s2v)
    model_v2s = lambda z: jnp.einsum("bte,ed->btd", z, w_v2s)

    lambda_id1s, lambda_id2s = 1.0, 0.5

    fwd = jax.jit(
        functools.partial(
            identical_loss_forward,
            model_s2v,
            model_v2s,
            lambda_id1s=lambda_id1s,
            lambda_id2s=lambda_id2s,
        )
    )
    loss, loss_dict = fwd(x)
    jax.block_until_ready(loss)
    jax.block_until_ready(loss_dict)

    # Reference check against plain JAX.
    pred_ref = model_v2s(model_s2v(x))
    l1_ref = jnp.mean(jnp.abs(x - pred_ref))
    l2_ref = jnp.mean((x - pred_ref) ** 2)
    loss_ref = l1_ref * lambda_id1s + l2_ref * lambda_id2s

    assert jnp.allclose(loss_dict["loss_id1s"], l1_ref, rtol=1e-5, atol=1e-6)
    assert jnp.allclose(loss_dict["loss_id2s"], l2_ref, rtol=1e-5, atol=1e-6)
    assert jnp.allclose(loss, loss_ref, rtol=1e-5, atol=1e-6)

    # Second check at a shape that exercises the ragged-tail mask path
    # (rows not a multiple of the row tile / cores).
    x_big = jax.random.normal(jax.random.PRNGKey(1), (3, 13, 128),
                              dtype=jnp.float32)
    id_s2v = lambda z: z * 0.9
    id_v2s = lambda z: z + 0.01
    loss_b, ld_b = jax.jit(
        functools.partial(identical_loss_forward, id_s2v, id_v2s,
                          lambda_id1s=lambda_id1s, lambda_id2s=lambda_id2s)
    )(x_big)
    jax.block_until_ready(loss_b)
    pred_b = id_v2s(id_s2v(x_big))
    assert jnp.allclose(ld_b["loss_id1s"], jnp.mean(jnp.abs(x_big - pred_b)),
                        rtol=1e-5, atol=1e-6)
    assert jnp.allclose(ld_b["loss_id2s"], jnp.mean((x_big - pred_b) ** 2),
                        rtol=1e-5, atol=1e-6)

    print("KERNEL_OK")
</pallas_src>

<mosaic_0001>
module attributes {stable_mosaic.version = 11 : i64} {
  func.func @_identical_loss_kernel(%arg0: i32, %arg1: i32, %arg2: memref<8x512xf32, #tpu.memory_space<vmem>>, %arg3: memref<8x512xf32, #tpu.memory_space<vmem>>, %arg4: memref<8x512xf32, #tpu.memory_space<vmem>>, %arg5: memref<8x512xf32, #tpu.memory_space<vmem>>) attributes {dimension_semantics = [#tpu.dimension_semantics<parallel>, #tpu.dimension_semantics<arbitrary>], iteration_bounds = array<i64: 1, 1>, scalar_prefetch = 0 : i64, scratch_operands = 0 : i64, tpu.core_type = #tpu.core_type<tc>, window_params = [{transform_indices = @transform_0, window_bounds = array<i64: 8, 512>}, {transform_indices = @transform_1, window_bounds = array<i64: 8, 512>}, {transform_indices = @transform_2, window_bounds = array<i64: 8, 512>}, {transform_indices = @transform_3, window_bounds = array<i64: 8, 512>}]} {
    %c0_i32 = arith.constant 0 : i32
    %0 = arith.cmpi eq, %arg1, %c0_i32 : i32
    %1 = arith.extui %0 : i1 to i32
    %c0_i32_0 = arith.constant 0 : i32
    %2 = arith.cmpi ne, %1, %c0_i32_0 : i32
    scf.if %2 {
      %cst_13 = arith.constant 0.000000e+00 : f32
      %18 = vector.broadcast %cst_13 : f32 to vector<8x512xf32>
      %c0_14 = arith.constant 0 : index
      %c0_15 = arith.constant 0 : index
      %19 = vector.load %arg4[%c0_14, %c0_15] : memref<8x512xf32, #tpu.memory_space<vmem>>, vector<8x512xf32>
      tpu.vector_store %arg4[%c0_14, %c0_15], %18 {strides = array<i32>} : memref<8x512xf32, #tpu.memory_space<vmem>>, vector<8x512xf32>,
      %cst_16 = arith.constant 0.000000e+00 : f32
      %20 = vector.broadcast %cst_16 : f32 to vector<8x512xf32>
      %c0_17 = arith.constant 0 : index
      %c0_18 = arith.constant 0 : index
      %21 = vector.load %arg5[%c0_17, %c0_18] : memref<8x512xf32, #tpu.memory_space<vmem>>, vector<8x512xf32>
      tpu.vector_store %arg5[%c0_17, %c0_18], %20 {strides = array<i32>} : memref<8x512xf32, #tpu.memory_space<vmem>>, vector<8x512xf32>,
    } else {
    }
    %c0 = arith.constant 0 : index
    %c0_1 = arith.constant 0 : index
    %3 = vector.load %arg2[%c0, %c0_1] : memref<8x512xf32, #tpu.memory_space<vmem>>, vector<8x512xf32>
    %c0_2 = arith.constant 0 : index
    %c0_3 = arith.constant 0 : index
    %4 = vector.load %arg3[%c0_2, %c0_3] : memref<8x512xf32, #tpu.memory_space<vmem>>, vector<8x512xf32>
    %5 = arith.subf %3, %4 : vector<8x512xf32>
    %6 = math.absf %5 : vector<8x512xf32>
    %7 = vector.shape_cast %6 : vector<8x512xf32> to vector<1x8x512xf32>
    %8 = arith.mulf %5, %5 : vector<8x512xf32>
    %9 = vector.shape_cast %8 : vector<8x512xf32> to vector<1x8x512xf32>
    %c0_4 = arith.constant 0 : index
    %c0_5 = arith.constant 0 : index
    %10 = vector.load %arg4[%c0_4, %c0_5] : memref<8x512xf32, #tpu.memory_space<vmem>>, vector<8x512xf32>
    %cst = arith.constant dense<0.000000e+00> : vector<8x512xf32>
    %11 = vector.multi_reduction <add>, %7, %cst [0] : vector<1x8x512xf32> to vector<8x512xf32>
    %12 = arith.addf %10, %11 : vector<8x512xf32>
    %c0_6 = arith.constant 0 : index
    %c0_7 = arith.constant 0 : index
    %13 = vector.load %arg4[%c0_6, %c0_7] : memref<8x512xf32, #tpu.memory_space<vmem>>, vector<8x512xf32>
    tpu.vector_store %arg4[%c0_6, %c0_7], %12 {strides = array<i32>} : memref<8x512xf32, #tpu.memory_space<vmem>>, vector<8x512xf32>,
    %c0_8 = arith.constant 0 : index
    %c0_9 = arith.constant 0 : index
    %14 = vector.load %arg5[%c0_8, %c0_9] : memref<8x512xf32, #tpu.memory_space<vmem>>, vector<8x512xf32>
    %cst_10 = arith.constant dense<0.000000e+00> : vector<8x512xf32>
    %15 = vector.multi_reduction <add>, %9, %cst_10 [0] : vector<1x8x512xf32> to vector<8x512xf32>
    %16 = arith.addf %14, %15 : vector<8x512xf32>
    %c0_11 = arith.constant 0 : index
    %c0_12 = arith.constant 0 : index
    %17 = vector.load %arg5[%c0_11, %c0_12] : memref<8x512xf32, #tpu.memory_space<vmem>>, vector<8x512xf32>
    tpu.vector_store %arg5[%c0_11, %c0_12], %16 {strides = array<i32>} : memref<8x512xf32, #tpu.memory_space<vmem>>, vector<8x512xf32>,
    return
  }
  func.func @transform_0(%arg0: i32, %arg1: i32) -> (i32, i32) {
    %c1_i32 = arith.constant 1 : i32
    %0 = arith.muli %arg0, %c1_i32 : i32
    %1 = arith.addi %0, %arg1 : i32
    %c0_i32 = arith.constant 0 : i32
    %c0_i32_0 = arith.constant 0 : i32
    return %1, %c0_i32 : i32, i32
  }
  func.func @transform_1(%arg0: i32, %arg1: i32) -> (i32, i32) {
    %c1_i32 = arith.constant 1 : i32
    %0 = arith.muli %arg0, %c1_i32 : i32
    %1 = arith.addi %0, %arg1 : i32
    %c0_i32 = arith.constant 0 : i32
    %c0_i32_0 = arith.constant 0 : i32
    return %1, %c0_i32 : i32, i32
  }
  func.func @transform_2(%arg0: i32, %arg1: i32) -> (i32, i32) {
    %c0_i32 = arith.constant 0 : i32
    %c0_i32_0 = arith.constant 0 : i32
    return %arg0, %c0_i32 : i32, i32
  }
  func.func @transform_3(%arg0: i32, %arg1: i32) -> (i32, i32) {
    %c0_i32 = arith.constant 0 : i32
    %c0_i32_0 = arith.constant 0 : i32
    return %arg0, %c0_i32 : i32, i32
  }
}

</mosaic_0001>

<bundles_post_ra>
// kernel: identical_loss_forward.1
= control target key start
LH: loop header
LB: loop body
LE: loop exit
PB: predicated region body
PF: predicated region fallthrough
CT: control target
= control target key end

     0   :  { %s206_s0 = inlined_call_operand.vmem [shape: f32[8,512], index: 0, kind: input, shape index: {}]   ;;  %s207_s1 = inlined_call_operand.vmem [shape: f32[8,512], index: 1, kind: input, shape index: {}]   ;;  %s208_s2 = inlined_call_operand.vmem [shape: f32[8,512], index: 2, kind: output, shape index: {0}]   ;;  %s209_s3 = inlined_call_operand.vmem [shape: f32[8,512], index: 3, kind: output, shape index: {1}]  }
   0x1   :  { %v65_v0 = vld [vmem:[%s206_s0] sm:$0xff]  ;;  %v66_v2 = vld [vmem:[%s206_s0 + $0x8] sm:$0xff]  ;;  %v67_v5 = vld [vmem:[%s206_s0 + $0x10] sm:$0xff] }
   0x2   :  { %v69_v1 = vld [vmem:[%s207_s1] sm:$0xff]  ;;  %v70_v4 = vld [vmem:[%s207_s1 + $0x8] sm:$0xff]  ;;  %v71_v6 = vld [vmem:[%s207_s1 + $0x10] sm:$0xff] }
   0x3   :  { %v73_v3 = vsub.f32 %v65_v0, %v69_v1  ;;  %v74_v7 = vsub.f32 %v66_v2, %v70_v4  ;;  %v75_v8 = vsub.f32 %v67_v5, %v71_v6  ;;  %v68_v9 = vld [vmem:[%s206_s0 + $0x18] sm:$0xff] }
   0x4   :  { %v72_v10 = vld [vmem:[%s207_s1 + $0x18] sm:$0xff] }
   0x5   :  { %v77_v11 = vand.u32 2147483647, %v73_v3  ;;  %v76_v12 = vsub.f32 %v68_v9, %v72_v10  ;;  %v81_v13 = vmul.f32 %v73_v3, %v73_v3  ;;  %v78_v14 = vand.u32 2147483647, %v74_v7 }
   0x6   :  { %v79_v15 = vand.u32 2147483647, %v75_v8  ;;  %v82_v16 = vmul.f32 %v74_v7, %v74_v7  ;;  %v83_v17 = vmul.f32 %v75_v8, %v75_v8 }
   0x7   :  { %v80_v18 = vand.u32 2147483647, %v76_v12  ;;  %v84_v19 = vmul.f32 %v76_v12, %v76_v12  ;;  %97 = vst [vmem:[%s208_s2] sm:$0xff] %v77_v11  ;;  %113 = vst [vmem:[%s209_s3] sm:$0xff] %v81_v13 }
   0x8   :  { %98 = vst [vmem:[%s208_s2 + $0x8] sm:$0xff] %v78_v14  ;;  %99 = vst [vmem:[%s208_s2 + $0x10] sm:$0xff] %v79_v15 }
   0x9   :  { %114 = vst [vmem:[%s209_s3 + $0x8] sm:$0xff] %v82_v16  ;;  %115 = vst [vmem:[%s209_s3 + $0x10] sm:$0xff] %v83_v17 }
   0xa   :  { %100 = vst [vmem:[%s208_s2 + $0x18] sm:$0xff] %v80_v18  ;;  %116 = vst [vmem:[%s209_s3 + $0x18] sm:$0xff] %v84_v19 }

</bundles_post_ra>
